<compile_context>
chip_gen: v6e
topology: v6e:2x2x1
jax: 0.10.0
libtpu: 0.0.40
codegen_flags: <defaults>
</compile_context>

<pallas_src>
import functools
from typing import NamedTuple

import jax
import jax.numpy as jnp
from jax.experimental import pallas as pl
from jax.experimental.pallas import tpu as pltpu

LANE = 128           # lane width / MXU alignment
ROW_ALIGN = 16       # bf16 sublane packing: 16 rows per vreg


def _round_up(x, m):
    return ((x + m - 1) // m) * m


def _tpu_generation():
    try:
        kind = jax.devices()[0].device_kind.lower()
    except Exception:
        return "unknown"
    if "v5e" in kind or "v5 lite" in kind or "v5litepod" in kind:
        return "v5e"
    if "v6" in kind:
        return "v6e"
    if "v7" in kind:
        return "v7x"
    return "unknown"


def _vmem_limit_bytes():
    """Generation-aware scoped-VMEM limit (headroom below physical capacity)."""
    cap = None
    try:
        cap = pltpu.get_tpu_info().vmem_capacity_bytes
    except Exception:
        cap = None
    if cap is None:
        cap = 64 * 1024 * 1024 if _tpu_generation() == "v7x" else 128 * 1024 * 1024
    if cap <= 64 * 1024 * 1024:          # v7x: 64 MiB per TensorCore
        return 48 * 1024 * 1024
    return 100 * 1024 * 1024             # v5e / v6e: 128 MiB physical


def _default_block_m():
    gen = _tpu_generation()
    if gen == "v5e":
        return 128     # single vst slot, 128-wide MXU: keep the f32 h small
    if gen == "v6e":
        return 512     # plentiful VMEM: larger row tile amortizes per-step cost
    return 256         # v7x / unknown


def _choose_tm(M, block_m):
    """Row tile: multiple of 16, >=2 tiles when possible (v7x dual-TC sharding
    + pipeline overlap), and <= ~25% ragged-M tail waste."""
    m16 = _round_up(M, ROW_ALIGN)
    if m16 <= 2 * ROW_ALIGN:
        return m16                       # tiny M: one small tile
    best = ROW_ALIGN
    t = ROW_ALIGN
    upper = min(block_m, m16)
    while t <= upper:
        mp = _round_up(M, t)
        waste = mp - M
        if mp // t >= 2 and waste * 4 <= M:
            best = t
        t += ROW_ALIGN
    return best


class FFNMeta(NamedTuple):
    n_embed: int   # logical E
    hidden: int    # logical H = 4*E
    Ep: int        # padded E (lane-dense)
    Hp: int        # padded H (multiple of tk)
    mode: str      # "resident" | "stream"
    tk: int        # H-block for streaming path (== Hp when resident)


def prepare_ffn_params(w1, b1, w2, b2, *, mode=None):
    """Pad + cast the FFN weights ONCE (hoisted out of the per-call hot path).

    Returns (params, meta). `params` are padded bf16/f32 device arrays that the
    caller should cache and reuse for every ffn_pallas call.
    """
    E, H = w1.shape
    assert w2.shape == (H, E) and b1.shape == (H,) and b2.shape == (E,)
    Ep = _round_up(E, LANE)
    Hp = _round_up(H, LANE)

    vmem_limit = _vmem_limit_bytes()
    # Single-buffered resident bf16 W1+W2 plus f32 biases.
    resident_bytes = 2 * Ep * Hp * 2 + (Hp + Ep) * 4
    if mode is None:
        mode = "resident" if resident_bytes <= (vmem_limit * 6) // 10 else "stream"

    if mode == "stream":
        # Double-buffered (Ep, tk) + (tk, Ep) bf16 weight blocks use <=~40% of
        # the VMEM budget; pad H up to a multiple of tk so every block is full.
        per_col = 2 * (2 * Ep * 2)       # W1 col + W2 row, bf16, double-buffered
        tk = max(LANE, ((vmem_limit * 4 // 10) // per_col) // LANE * LANE)
        tk = min(tk, Hp)
        Hp = _round_up(Hp, tk)
    else:
        tk = Hp

    w1p = jnp.pad(w1, ((0, Ep - E), (0, Hp - H))).astype(jnp.bfloat16)
    w2p = jnp.pad(w2, ((0, Hp - H), (0, Ep - E))).astype(jnp.bfloat16)
    b1p = jnp.pad(b1, (0, Hp - H)).reshape(1, Hp).astype(jnp.float32)
    b2p = jnp.pad(b2, (0, Ep - E)).reshape(1, Ep).astype(jnp.float32)
    return (w1p, b1p, w2p, b2p), FFNMeta(E, H, Ep, Hp, mode, tk)


# --------------------------------------------------------------------------
# Kernels
# --------------------------------------------------------------------------
def _ffn_kernel_resident(x_ref, w1_ref, b1_ref, w2_ref, b2_ref, o_ref):
    # x_ref: (TM, Ep) f32 | w1: (Ep, Hp) bf16 | b1: (1, Hp) f32
    # w2: (Hp, Ep) bf16   | b2: (1, Ep) f32   | o: (TM, Ep) out_dtype
    x = x_ref[...].astype(jnp.bfloat16)                                  # in-kernel cast
    h = jnp.dot(x, w1_ref[...], preferred_element_type=jnp.float32)     # MXU, f32 acc
    h = jnp.maximum(h + b1_ref[...], 0.0).astype(jnp.bfloat16)          # bias + ReLU
    y = jnp.dot(h, w2_ref[...], preferred_element_type=jnp.float32) + b2_ref[...]
    o_ref[...] = y.astype(o_ref.dtype)


def _ffn_kernel_stream(x_ref, w1_ref, b1_ref, w2_ref, b2_ref, o_ref, acc_ref):
    # Grid = (M tiles, H tiles); H axis is a reduction ("arbitrary", innermost).
    k = pl.program_id(1)

    @pl.when(k == 0)
    def _():
        acc_ref[...] = jnp.zeros_like(acc_ref)

    x = x_ref[...].astype(jnp.bfloat16)
    h = jnp.dot(x, w1_ref[...], preferred_element_type=jnp.float32)     # (TM, tk)
    h = jnp.maximum(h + b1_ref[...], 0.0).astype(jnp.bfloat16)
    acc_ref[...] += jnp.dot(h, w2_ref[...], preferred_element_type=jnp.float32)

    @pl.when(k == pl.num_programs(1) - 1)
    def _():
        o_ref[...] = (acc_ref[...] + b2_ref[...]).astype(o_ref.dtype)


# --------------------------------------------------------------------------
# Wrapper
# --------------------------------------------------------------------------
@functools.partial(jax.jit, static_argnames=("meta", "block_m", "out_dtype"))
def ffn_pallas(x, params, *, meta, block_m=None, out_dtype=jnp.float32):
    """x: (B, T, E); params/meta from prepare_ffn_params. Returns (B, T, E)."""
    w1p, b1p, w2p, b2p = params
    B, T, E = x.shape
    assert E == meta.n_embed
    Ep, Hp, tk = meta.Ep, meta.Hp, meta.tk
    M = B * T

    if block_m is None:
        block_m = _default_block_m()
    TM = _choose_tm(M, block_m)
    MP = _round_up(M, TM)
    n_m = MP // TM

    x2d = x.reshape(M, E)
    if MP != M or Ep != E:
        x2d = jnp.pad(x2d, ((0, MP - M), (0, Ep - E)))   # no wrapper-side cast

    vmem_limit = _vmem_limit_bytes()
    bytes_accessed = int(
        MP * Ep * jnp.dtype(x2d.dtype).itemsize
        + 2 * Ep * Hp * 2 + (Hp + Ep) * 4
        + MP * Ep * jnp.dtype(out_dtype).itemsize)
    cost = pl.CostEstimate(flops=4 * MP * Ep * Hp,
                           transcendentals=0,
                           bytes_accessed=bytes_accessed)

    if meta.mode == "resident":
        out = pl.pallas_call(
            _ffn_kernel_resident,
            out_shape=jax.ShapeDtypeStruct((MP, Ep), out_dtype),
            grid=(n_m,),
            in_specs=[
                pl.BlockSpec((TM, Ep), lambda i: (i, 0)),              # x streams along M
                pl.BlockSpec((Ep, Hp), lambda i: (0, 0),
                             pipeline_mode=pl.Buffered(1)),            # W1 resident, 1 buf
                pl.BlockSpec((1, Hp), lambda i: (0, 0),
                             pipeline_mode=pl.Buffered(1)),            # b1
                pl.BlockSpec((Hp, Ep), lambda i: (0, 0),
                             pipeline_mode=pl.Buffered(1)),            # W2
                pl.BlockSpec((1, Ep), lambda i: (0, 0),
                             pipeline_mode=pl.Buffered(1)),            # b2
            ],
            out_specs=pl.BlockSpec((TM, Ep), lambda i: (i, 0)),
            compiler_params=pltpu.CompilerParams(
                dimension_semantics=("parallel",),
                vmem_limit_bytes=vmem_limit),
            cost_estimate=cost,
        )(x2d, w1p, b1p, w2p, b2p)
    else:
        n_k = Hp // tk
        out = pl.pallas_call(
            _ffn_kernel_stream,
            out_shape=jax.ShapeDtypeStruct((MP, Ep), out_dtype),
            grid=(n_m, n_k),
            in_specs=[
                pl.BlockSpec((TM, Ep), lambda i, k: (i, 0)),           # x tile, constant in k
                pl.BlockSpec((Ep, tk), lambda i, k: (0, k)),           # W1 streams over H
                pl.BlockSpec((1, tk), lambda i, k: (0, k)),            # b1 streams over H
                pl.BlockSpec((tk, Ep), lambda i, k: (k, 0)),           # W2 streams over H
                pl.BlockSpec((1, Ep), lambda i, k: (0, 0),
                             pipeline_mode=pl.Buffered(1)),            # b2 resident
            ],
            out_specs=pl.BlockSpec((TM, Ep), lambda i, k: (i, 0)),
            scratch_shapes=[pltpu.VMEM((TM, Ep), jnp.float32)],
            compiler_params=pltpu.CompilerParams(
                dimension_semantics=("parallel", "arbitrary"),
                vmem_limit_bytes=vmem_limit),
            cost_estimate=cost,
        )(x2d, w1p, b1p, w2p, b2p)

    # TODO(synk): for extremely large E (>~8k) also split Ep (GEMM1-K / GEMM2-N)
    # so the x tile and acc scratch stream through VMEM as well.
    return out[:M, :E].reshape(B, T, E)


def ffn(x, w1, b1, w2, b2, **kw):
    """Convenience wrapper (prepares params on every call; prefer caching)."""
    params, meta = prepare_ffn_params(w1, b1, w2, b2)
    return ffn_pallas(x, params, meta=meta, **kw)


def init_ffn_params(key, n_embed):
    """Deterministic init matching nn.Linear (U(-1/sqrt(fan_in), 1/sqrt(fan_in)))."""
    h = n_embed * 4
    k1, k2, k3, k4 = jax.random.split(key, 4)
    bound1 = 1.0 / jnp.sqrt(n_embed)
    bound2 = 1.0 / jnp.sqrt(h)
    w1 = jax.random.uniform(k1, (n_embed, h), jnp.float32, -bound1, bound1)
    b1 = jax.random.uniform(k2, (h,), jnp.float32, -bound1, bound1)
    w2 = jax.random.uniform(k3, (h, n_embed), jnp.float32, -bound2, bound2)
    b2 = jax.random.uniform(k4, (n_embed,), jnp.float32, -bound2, bound2)
    return w1, b1, w2, b2


if __name__ == "__main__":
    key = jax.random.PRNGKey(0)
    k_x, k_p = jax.random.split(key)

    B, T, n_embed = 2, 8, 32  # small shapes consistent with the module
    x = jax.random.normal(k_x, (B, T, n_embed), jnp.float32)
    w1, b1, w2, b2 = init_ffn_params(k_p, n_embed)

    ref = jnp.maximum(x @ w1 + b1, 0.0) @ w2 + b2

    # Fast path: weights padded/cast once, VMEM-resident, single-buffered.
    params, meta = prepare_ffn_params(w1, b1, w2, b2)
    y = ffn_pallas(x, params, meta=meta)
    jax.block_until_ready(y)
    assert y.shape == (B, T, n_embed)
    assert jnp.allclose(y, ref, atol=2e-2, rtol=2e-2), float(jnp.max(jnp.abs(y - ref)))

    # H-streaming path (auto-selected when weights exceed the VMEM budget,
    # e.g. large E on v7x); force it here to validate it end-to-end.
    params_s, meta_s = prepare_ffn_params(w1, b1, w2, b2, mode="stream")
    y_s = ffn_pallas(x, params_s, meta=meta_s)
    jax.block_until_ready(y_s)
    assert jnp.allclose(y_s, ref, atol=2e-2, rtol=2e-2), float(jnp.max(jnp.abs(y_s - ref)))

    print("KERNEL_OK")
</pallas_src>

<mosaic_0001>
module attributes {stable_mosaic.version = 11 : i64} {
  func.func @_ffn_kernel_resident(%arg0: i32, %arg1: memref<16x128xf32, #tpu.memory_space<vmem>>, %arg2: memref<128x128xbf16, #tpu.memory_space<vmem>>, %arg3: memref<1x128xf32, #tpu.memory_space<vmem>>, %arg4: memref<128x128xbf16, #tpu.memory_space<vmem>>, %arg5: memref<1x128xf32, #tpu.memory_space<vmem>>, %arg6: memref<16x128xf32, #tpu.memory_space<vmem>>) attributes {dimension_semantics = [#tpu.dimension_semantics<parallel>], iteration_bounds = array<i64: 1>, scalar_prefetch = 0 : i64, scratch_operands = 0 : i64, tpu.core_type = #tpu.core_type<tc>, window_params = [{transform_indices = @transform_0, window_bounds = array<i64: 16, 128>}, {pipeline_mode = #tpu.pipeline_mode<synchronous>, transform_indices = @transform_1, window_bounds = array<i64: 128, 128>}, {pipeline_mode = #tpu.pipeline_mode<synchronous>, transform_indices = @transform_2, window_bounds = array<i64: 1, 128>}, {pipeline_mode = #tpu.pipeline_mode<synchronous>, transform_indices = @transform_3, window_bounds = array<i64: 128, 128>}, {pipeline_mode = #tpu.pipeline_mode<synchronous>, transform_indices = @transform_4, window_bounds = array<i64: 1, 128>}, {transform_indices = @transform_5, window_bounds = array<i64: 16, 128>}]} {
    %c0 = arith.constant 0 : index
    %c0_0 = arith.constant 0 : index
    %0 = vector.load %arg1[%c0, %c0_0] : memref<16x128xf32, #tpu.memory_space<vmem>>, vector<16x128xf32>
    %1 = arith.truncf %0 : vector<16x128xf32> to vector<16x128xbf16>
    %c0_1 = arith.constant 0 : index
    %c0_2 = arith.constant 0 : index
    %2 = vector.load %arg2[%c0_1, %c0_2] : memref<128x128xbf16, #tpu.memory_space<vmem>>, vector<128x128xbf16>
    %cst = arith.constant dense<0.000000e+00> : vector<16x128xf32>
    %3 = tpu.matmul %1, %2, %cst {dimension_numbers = #tpu.dot_dimension_numbers<[1], [0], [0], [1], [0, 0, 1, 1], [], []>} : vector<16x128xbf16>, vector<128x128xbf16>, vector<16x128xf32> -> vector<16x128xf32>
    %c0_3 = arith.constant 0 : index
    %c0_4 = arith.constant 0 : index
    %4 = vector.load %arg3[%c0_3, %c0_4] : memref<1x128xf32, #tpu.memory_space<vmem>>, vector<1x128xf32>
    %5 = vector.broadcast %4 : vector<1x128xf32> to vector<16x128xf32>
    %6 = arith.addf %3, %5 : vector<16x128xf32>
    %cst_5 = arith.constant 0.000000e+00 : f32
    %7 = vector.broadcast %cst_5 : f32 to vector<16x128xf32>
    %8 = arith.maximumf %6, %7 : vector<16x128xf32>
    %9 = arith.truncf %8 : vector<16x128xf32> to vector<16x128xbf16>
    %c0_6 = arith.constant 0 : index
    %c0_7 = arith.constant 0 : index
    %10 = vector.load %arg4[%c0_6, %c0_7] : memref<128x128xbf16, #tpu.memory_space<vmem>>, vector<128x128xbf16>
    %cst_8 = arith.constant dense<0.000000e+00> : vector<16x128xf32>
    %11 = tpu.matmul %9, %10, %cst_8 {dimension_numbers = #tpu.dot_dimension_numbers<[1], [0], [0], [1], [0, 0, 1, 1], [], []>} : vector<16x128xbf16>, vector<128x128xbf16>, vector<16x128xf32> -> vector<16x128xf32>
    %c0_9 = arith.constant 0 : index
    %c0_10 = arith.constant 0 : index
    %12 = vector.load %arg5[%c0_9, %c0_10] : memref<1x128xf32, #tpu.memory_space<vmem>>, vector<1x128xf32>
    %13 = vector.broadcast %12 : vector<1x128xf32> to vector<16x128xf32>
    %14 = arith.addf %11, %13 : vector<16x128xf32>
    %c0_11 = arith.constant 0 : index
    %c0_12 = arith.constant 0 : index
    %15 = vector.load %arg6[%c0_11, %c0_12] : memref<16x128xf32, #tpu.memory_space<vmem>>, vector<16x128xf32>
    tpu.vector_store %arg6[%c0_11, %c0_12], %14 {strides = array<i32>} : memref<16x128xf32, #tpu.memory_space<vmem>>, vector<16x128xf32>,
    return
  }
  func.func @transform_0(%arg0: i32) -> (i32, i32) {
    %c0_i32 = arith.constant 0 : i32
    %c0_i32_0 = arith.constant 0 : i32
    return %arg0, %c0_i32 : i32, i32
  }
  func.func @transform_1(%arg0: i32) -> (i32, i32) {
    %c0_i32 = arith.constant 0 : i32
    %c0_i32_0 = arith.constant 0 : i32
    %c0_i32_1 = arith.constant 0 : i32
    return %c0_i32, %c0_i32_0 : i32, i32
  }
  func.func @transform_2(%arg0: i32) -> (i32, i32) {
    %c0_i32 = arith.constant 0 : i32
    %c0_i32_0 = arith.constant 0 : i32
    %c0_i32_1 = arith.constant 0 : i32
    return %c0_i32, %c0_i32_0 : i32, i32
  }
  func.func @transform_3(%arg0: i32) -> (i32, i32) {
    %c0_i32 = arith.constant 0 : i32
    %c0_i32_0 = arith.constant 0 : i32
    %c0_i32_1 = arith.constant 0 : i32
    return %c0_i32, %c0_i32_0 : i32, i32
  }
  func.func @transform_4(%arg0: i32) -> (i32, i32) {
    %c0_i32 = arith.constant 0 : i32
    %c0_i32_0 = arith.constant 0 : i32
    %c0_i32_1 = arith.constant 0 : i32
    return %c0_i32, %c0_i32_0 : i32, i32
  }
  func.func @transform_5(%arg0: i32) -> (i32, i32) {
    %c0_i32 = arith.constant 0 : i32
    %c0_i32_0 = arith.constant 0 : i32
    return %arg0, %c0_i32 : i32, i32
  }
}

</mosaic_0001>

<bundles_post_ra>
// kernel: ffn_pallas.1
= control target key start
LH: loop header
LB: loop body
LE: loop exit
PB: predicated region body
PF: predicated region fallthrough
CT: control target
= control target key end

     0   :  { %10 = vsyncpa [#allocation3], 0  ;;  %s489_s0 = inlined_call_operand.vmem [shape: f32[16,128], index: 0, kind: input, shape index: {}]   ;;  %s490_s1 = inlined_call_operand.hbm [shape: bf16[128,128], index: 1, kind: input, shape index: {}]   ;;  %s491_s2 = inlined_call_operand.vmem [shape: f32[1,128], index: 2, kind: input, shape index: {}]   ;;  %s492_s3 = inlined_call_operand.hbm [shape: bf16[128,128], index: 3, kind: input, shape index: {}]   ;;  %s493_s4 = inlined_call_operand.vmem [shape: f32[1,128], index: 4, kind: input, shape index: {}]   ;;  %s494_s5 = inlined_call_operand.vmem [shape: f32[16,128], index: 5, kind: output, shape index: {}]  }
   0x1   :  { %11 = vsyncpa [#allocation5], 0  ;;  %s429_s18 = smov [#allocation2]  }
   0x2   :  { %s19_s19 = sshll.u32 %s429_s18, 4  ;;  %s20_s19 = int_to_ptr.vmem [resolvable:$true] %s19_s19 }
   0x3   :  { %s393_s20 = scalar_lea.vmem %s20_s19, 1024  ;;  %p398_p1 = scmp.lt.s32.totalorder %s20_s19, %s20_s19 }
   0x4   :  { %p394_p0 = scmp.ne.s32.totalorder %s20_s19, %s393_s20  ;;  %p399_p2 = scmp.lt.s32.totalorder %s393_s20, %s393_s20 }
   0x6   :  { %p400_p3 = por %p399_p2, %p398_p1 }
   0x8   :  { %p401_p4 = pnand %p400_p3, %p394_p0 }
   0xa   :  { %404 = shalt.err (!%p401_p4)
}
   0xb   :  { %s430_s21 = smov 64   ;;  %s431_s22 = smov 4  }
   0xc   :  { %25 = dma.hbm_to_vmem [thread:$0]  %s490_s1, 1024, %s20_s19, [#allocation3], %s430_s21, %s430_s21, %s431_s22  }
   0xd   :  { %s432_s25 = smov [#allocation4]  }
   0xe   :  { %s33_s26 = sshll.u32 %s432_s25, 4  ;;  %s34_s26 = int_to_ptr.vmem [resolvable:$true] %s33_s26 }
   0xf   :  { %s413_s27 = scalar_lea.vmem %s34_s26, 1024  ;;  %p418_p6 = scmp.lt.s32.totalorder %s34_s26, %s34_s26 }
  0x10   :  { %p414_p5 = scmp.ne.s32.totalorder %s34_s26, %s413_s27  ;;  %p419_p7 = scmp.lt.s32.totalorder %s413_s27, %s413_s27 }
  0x12   :  { %p420_p8 = por %p419_p7, %p418_p6 }
  0x14   :  { %p421_p9 = pnand %p420_p8, %p414_p5 }
  0x16   :  { %424 = shalt.err (!%p421_p9)
}
  0x17   :  { %39 = dma.hbm_to_vmem [thread:$0]  %s492_s3, 1024, %s34_s26, [#allocation5], %s430_s21, %s430_s21, %s431_s22  }
  0x18   :  { %425 = dma.done.wait [#allocation3], 1024  }
  0x19   :  { %426 = vsyncadd [#allocation3], 4294966272 }
  0x1a   :  { %427 = dma.done.wait [#allocation5], 1024  }
  0x1b   :  { %428 = vsyncadd [#allocation5], 4294966272  ;;  %v433_v0 = vmov 0.0   ;;  %vm434_vm0 = vmmov 0   ;;  %v369_v1 = vld [vmem:[#allocation2 + $0x38] sm:$0xff]   ;;  %v370_v2 = vld [vmem:[#allocation2 + $0x30] sm:$0xff]  }
  0x1c   :  { %323 = vmatprep.subr.bf16.mxu0 %v433_v0  ;;  %339 = vmatprep.mubr.msk.bf16.mxu0 %vm434_vm0, %v433_v0  ;;  %v371_v3 = vld [vmem:[#allocation2 + $0x28] sm:$0xff]   ;;  %v377_v4 = vld [vmem:[#allocation4 + $0x38] sm:$0xff]   ;;  %v372_v5 = vld [vmem:[#allocation2 + $0x20] sm:$0xff]  }
  0x1d   :  { %343 = vmatprep.subr.bf16.mxu1 %v433_v0  ;;  %359 = vmatprep.mubr.msk.bf16.mxu1 %vm434_vm0, %v433_v0  ;;  %v378_v6 = vld [vmem:[#allocation4 + $0x30] sm:$0xff]   ;;  %v373_v7 = vld [vmem:[#allocation2 + $0x18] sm:$0xff]   ;;  %v379_v8 = vld [vmem:[#allocation4 + $0x28] sm:$0xff]  }
  0x1e   :  { %324 = vmatpush3.bf16.msra.mxu0 %v369_v1  ;;  %344 = vmatpush3.bf16.msra.mxu1 %v377_v4  ;;  %v374_v9 = vld [vmem:[#allocation2 + $0x10] sm:$0xff]   ;;  %v380_v10 = vld [vmem:[#allocation4 + $0x20] sm:$0xff]   ;;  %v375_v11 = vld [vmem:[#allocation2 + $0x8] sm:$0xff]  }
  0x1f   :  { %325 = vmatprep.subr.bf16.mxu0 %v433_v0  ;;  %345 = vmatprep.subr.bf16.mxu1 %v433_v0  ;;  %v381_v12 = vld [vmem:[#allocation4 + $0x18] sm:$0xff]   ;;  %v376_v13 = vld [vmem:[#allocation2] sm:$0xff]   ;;  %v50_v15 = vld [vmem:[%s489_s0 + $0x8] sm:$0xff] }
  0x20   :  { %v49_v14 = vld [vmem:[%s489_s0] sm:$0xff]  ;;  %v382_v17 = vld [vmem:[#allocation4 + $0x10] sm:$0xff]   ;;  %v383_v18 = vld [vmem:[#allocation4 + $0x8] sm:$0xff]  }
  0x21   :  { %v51_v16 = vpack.c.bf16 %v50_v15, %v49_v14  ;;  %v384_v19 = vld [vmem:[#allocation4] sm:$0xff]  }
  0x22   :  { %326 = vmatpush3.bf16.msra.mxu0 %v370_v2  ;;  %346 = vmatpush3.bf16.msra.mxu1 %v378_v6  ;;  %v287_v20 = vld [vmem:[%s491_s2] ss:$0 sm:$0xff] }
  0x23   :  { %327 = vmatprep.subr.bf16.mxu0 %v433_v0  ;;  %347 = vmatprep.subr.bf16.mxu1 %v433_v0  ;;  %v296_v30 = vld [vmem:[%s493_s4] ss:$0 sm:$0xff] }
  0x26   :  { %328 = vmatpush3.bf16.msra.mxu0 %v371_v3  ;;  %348 = vmatpush3.bf16.msra.mxu1 %v379_v8 }
  0x27   :  { %329 = vmatprep.subr.bf16.mxu0 %v433_v0  ;;  %349 = vmatprep.subr.bf16.mxu1 %v433_v0 }
  0x2a   :  { %330 = vmatpush3.bf16.msra.mxu0 %v372_v5  ;;  %350 = vmatpush3.bf16.msra.mxu1 %v380_v10 }
  0x2b   :  { %331 = vmatprep.subr.bf16.mxu0 %v433_v0  ;;  %351 = vmatprep.subr.bf16.mxu1 %v433_v0 }
  0x2e   :  { %332 = vmatpush3.bf16.msra.mxu0 %v373_v7  ;;  %352 = vmatpush3.bf16.msra.mxu1 %v381_v12 }
  0x2f   :  { %333 = vmatprep.subr.bf16.mxu0 %v433_v0  ;;  %353 = vmatprep.subr.bf16.mxu1 %v433_v0 }
  0x32   :  { %334 = vmatpush3.bf16.msra.mxu0 %v374_v9  ;;  %354 = vmatpush3.bf16.msra.mxu1 %v382_v17 }
  0x33   :  { %335 = vmatprep.subr.bf16.mxu0 %v433_v0  ;;  %355 = vmatprep.subr.bf16.mxu1 %v433_v0 }
  0x36   :  { %336 = vmatpush3.bf16.msra.mxu0 %v375_v11  ;;  %356 = vmatpush3.bf16.msra.mxu1 %v383_v18 }
  0x37   :  { %337 = vmatprep.subr.bf16.mxu0 %v433_v0  ;;  %357 = vmatprep.subr.bf16.mxu1 %v433_v0 }
  0x3a   :  { %338 = vmatpush3.bf16.msra.mxu0 %v376_v13  ;;  %358 = vmatpush3.bf16.msra.mxu1 %v384_v19 }
  0x3d   :  { %340 = vmatmul.mubr.bf16.vlgmr.msra.gmra.mxu0 %v51_v16 }
  0xfd   :  { %v157_v21 = vpop.f32.mrf.mxu0 }
  0xfe   :  { %v158_v23 = vadd.f32 %v287_v20, %v157_v21 }
  0xff   :  { %v341_v22 = vpop.f32.mrf.mxu0 }
 0x100   :  { %v164_v27 = vmax.f32 %v158_v23, 0.0 }
 0x101   :  { %v160_v24 = vpop.f32.mrf.mxu0 }
 0x102   :  { %v161_v25 = vadd.f32 %v287_v20, %v160_v24 }
 0x103   :  { %v342_v26 = vpop.f32.mrf.mxu0 }
 0x104   :  { %v165_v28 = vmax.f32 %v161_v25, 0.0 }
 0x106   :  { %v166_v29 = vpack.c.bf16 %v165_v28, %v164_v27 }
 0x108   :  { %360 = vmatmul.mubr.bf16.vlgmr.msra.gmra.mxu1 %v166_v29 }
 0x1c8   :  { %v272_v31 = vpop.f32.mrf.mxu1 }
 0x1c9   :  { %v273_v32 = vadd.f32 %v296_v30, %v272_v31 }
 0x1ca   :  { %v361_v33 = vpop.f32.mrf.mxu1 }
 0x1cb   :  { %279 = vst [vmem:[%s494_s5] sm:$0xff] %v273_v32 }
 0x1cc   :  { %v275_v34 = vpop.f32.mrf.mxu1 }
 0x1cd   :  { %v276_v35 = vadd.f32 %v296_v30, %v275_v34 }
 0x1ce   :  { %v362_v36 = vpop.f32.mrf.mxu1 }
 0x1cf   :  { %280 = vst [vmem:[%s494_s5 + $0x8] sm:$0xff] %v276_v35 }
 0x1d0   :  { %285 = vsyncpa [#allocation3], 1 }
 0x1d1   :  { %286 = vsyncpa [#allocation5], 1 }

</bundles_post_ra>
